<compile_context>
chip_gen: v7x
topology: tpu7x:2x2x1
jax: 0.10.0
libtpu: 0.0.40
codegen_flags: <defaults>
</compile_context>

<pallas_src>
import jax
import jax.numpy as jnp
from jax.experimental import pallas as pl
from jax.experimental.pallas import tpu as pltpu

_LANE = 128
_SUBLANE = 8
_MIN_DMA_BYTES = 1 << 20  # pack batches until each input block moves >= ~1 MiB


def _round_up(x: int, m: int) -> int:
    return ((x + m - 1) // m) * m


def _cdiv(a: int, b: int) -> int:
    return -(-a // b)


def _vmem_capacity_bytes() -> int:
    """Physical VMEM of the local TPU; conservative (v7x per-TC) fallback."""
    try:
        info = pltpu.get_tpu_info()
        cap = getattr(info, "vmem_capacity_bytes", None)
        if cap:
            return int(cap)
    except Exception:
        pass
    return 64 * 1024 * 1024


def _make_kernel(C: int, B_t: int, t_h: int, nh_valid: int, needs_mask: bool):
    """Build the per-(batch-tile, spatial-tile) kernel.

    pred_ref / targ_ref : (B_t, C, t_h, 128) VMEM tiles (input dtype)
    out_ref             : (1, 1, 1, 128) f32 lane-parallel partial sum
    All closed-over values are Python ints/bools (baked in at trace time).
    """

    def kernel(pred_ref, targ_ref, out_ref):
        # Channel-by-channel accumulation: only ~3 channel-slice f32
        # temporaries + one (B_t, t_h, 128) accumulator live at a time.
        sq = jnp.zeros((B_t, t_h, _LANE), jnp.float32)
        for c in range(C):  # static unroll; channel reduce = C-1 VPU adds
            t = targ_ref[:, c, :, :].astype(jnp.float32)
            p = pred_ref[:, c, :, :].astype(jnp.float32)
            e = jnp.exp(1.0 + jnp.abs(t)) * (t - p)  # EUP exp + VPU
            sq = sq + e * e

        if needs_mask:
            # Last spatial tile overflows past the true row count (boundary
            # block); mask the garbage rows.  A few VPU ops, free under the
            # HBM roofline.
            s = pl.program_id(1)
            row = jax.lax.broadcasted_iota(jnp.int32, (B_t, t_h, _LANE), 1)
            sq = jnp.where(s * t_h + row < nh_valid, sq, 0.0)

        mag = jnp.sqrt(sq)  # (B_t, t_h, 128) == errorMag tile

        # Fold to a single lane-dense (128,) partial: VPU adds across
        # vreg-rows + one cheap sublane reduce.  Output traffic per step is
        # 512 B — negligible vs the multi-MiB input DMA.
        partial = jnp.sum(jnp.sum(mag, axis=0), axis=0)
        out_ref[...] = partial.reshape(1, 1, 1, _LANE)

    return kernel


def wave_loss(pred: jax.Array, target: jax.Array) -> jax.Array:
    """WaveLoss forward. pred/target: (B, C, H, W) floats. Returns scalar f32."""
    assert pred.shape == target.shape
    B, C, H, W = pred.shape
    HW = H * W
    itemsize = jnp.dtype(pred.dtype).itemsize

    # ---- generation-aware budgets ------------------------------------------
    vmem_cap = _vmem_capacity_bytes()
    if vmem_cap >= 96 * 1024 * 1024:          # v5e / v6e: 128 MiB VMEM
        block_target = 6 * 1024 * 1024        # per-input block
        base_vmem_limit = 64 * 1024 * 1024
    else:                                     # v7x: 64 MiB per TensorCore
        block_target = 3 * 1024 * 1024
        base_vmem_limit = 32 * 1024 * 1024

    # ---- spatial layout: (B, C, HW) -> (B, C, nh, 128) ----------------------
    # Only pad the <=127-element 128-lane tail (zeros contribute exactly 0);
    # the reshape itself is a free, layout-preserving view.
    hw_pad = _round_up(HW, _LANE)
    nh = hw_pad // _LANE

    def prep(x):
        x = x.reshape(B, C, HW)
        if hw_pad != HW:
            # TODO(synk): avoid this full-array copy with a manual-DMA path.
            x = jnp.pad(x, ((0, 0), (0, 0), (0, hw_pad - HW)))
        return x.reshape(B, C, nh, _LANE)

    pred_r = prep(pred)
    targ_r = prep(target)

    # ---- balanced spatial tiling --------------------------------------------
    row_bytes = C * _LANE * itemsize                       # one spatial row
    t_h_max = max(_SUBLANE, ((block_target // row_bytes) // _SUBLANE) * _SUBLANE)

    if nh <= t_h_max:
        # Single spatial tile: block row-dim equals the full array dim, so any
        # value is legal — exact coverage, no masking.
        t_h, n_spatial = nh, 1
    else:
        # Balance tiles so padding waste stays < 8 rows total.
        n_spatial = _cdiv(nh, t_h_max)
        t_h = _round_up(_cdiv(nh, n_spatial), _SUBLANE)
    needs_mask = (n_spatial * t_h) != nh     # last tile reads a boundary block

    # ---- small-image batch packing ------------------------------------------
    B_t = 1
    per_batch_bytes = C * t_h * _LANE * itemsize
    if n_spatial == 1 and B > 1 and per_batch_bytes < _MIN_DMA_BYTES:
        max_bt = max(1, block_target // per_batch_bytes)
        for d in range(min(B, max_bt), 0, -1):
            if B % d == 0:
                B_t = d
                break

    block_bytes = B_t * per_batch_bytes
    vmem_limit = max(base_vmem_limit, 4 * block_bytes + (8 << 20))
    vmem_limit = min(vmem_limit, vmem_cap)

    kernel = _make_kernel(C, B_t, t_h, nh, needs_mask)

    partials = pl.pallas_call(
        kernel,
        out_shape=jax.ShapeDtypeStruct((B // B_t, n_spatial, 1, _LANE), jnp.float32),
        grid_spec=pltpu.PrefetchScalarGridSpec(
            num_scalar_prefetch=0,
            grid=(B // B_t, n_spatial),
            in_specs=[
                pl.BlockSpec((B_t, C, t_h, _LANE), lambda b, s: (b, 0, s, 0)),
                pl.BlockSpec((B_t, C, t_h, _LANE), lambda b, s: (b, 0, s, 0)),
            ],
            out_specs=pl.BlockSpec((1, 1, 1, _LANE), lambda b, s: (b, s, 0, 0)),
        ),
        compiler_params=pltpu.CompilerParams(
            # Private per-step partials -> fully independent grid points, so
            # both v7x TensorCores can stream HBM (do not convert the spatial
            # axis into an in-kernel accumulator).
            dimension_semantics=("parallel", "parallel"),
            vmem_limit_bytes=int(vmem_limit),
        ),
    )(pred_r, targ_r)

    # One final reduction + mean over the true (unpadded) element count.
    # NOTE: exp(1+|target|) overflows f32 for |target| >~ 87 — inherited from
    # the reference PyTorch implementation.
    return jnp.sum(partials) / jnp.float32(B * HW)


if __name__ == "__main__":
    key = jax.random.PRNGKey(0)
    k1, k2 = jax.random.split(key)

    B, C, H, W = 2, 4, 16, 16
    pred = jax.random.normal(k1, (B, C, H, W), dtype=jnp.float32)
    target = jax.random.normal(k2, (B, C, H, W), dtype=jnp.float32)

    loss = jax.block_until_ready(wave_loss(pred, target))

    # Pure-JAX reference.
    err = jnp.exp(1.0 + jnp.abs(target)) * (target - pred)
    ref = jnp.mean(jnp.sqrt(jnp.sum(err * err, axis=1)))

    assert jnp.allclose(loss, ref, rtol=1e-5, atol=1e-5), (loss, ref)
    print("KERNEL_OK")
</pallas_src>

<mosaic_0001>
module attributes {stable_mosaic.version = 11 : i64} {
  func.func @kernel(%arg0: i32, %arg1: i32, %arg2: memref<2x4x2x128xf32, #tpu.memory_space<vmem>>, %arg3: memref<2x4x2x128xf32, #tpu.memory_space<vmem>>, %arg4: memref<1x1x1x128xf32, #tpu.memory_space<vmem>>) attributes {dimension_semantics = [#tpu.dimension_semantics<parallel>, #tpu.dimension_semantics<parallel>], iteration_bounds = array<i64: 1, 1>, scalar_prefetch = 0 : i64, scratch_operands = 0 : i64, tpu.core_type = #tpu.core_type<tc>, window_params = [{transform_indices = @transform_0, window_bounds = array<i64: 2, 4, 2, 128>}, {transform_indices = @transform_1, window_bounds = array<i64: 2, 4, 2, 128>}, {transform_indices = @transform_2, window_bounds = array<i64: 1, 1, 1, 128>}]} {
    %cst = arith.constant 0.000000e+00 : f32
    %0 = vector.broadcast %cst : f32 to vector<2x2x128xf32>
    %c0 = arith.constant 0 : index
    %c0_0 = arith.constant 0 : index
    %c0_1 = arith.constant 0 : index
    %c0_2 = arith.constant 0 : index
    %1 = vector.load %arg3[%c0, %c0_0, %c0_1, %c0_2] : memref<2x4x2x128xf32, #tpu.memory_space<vmem>>, vector<2x1x2x128xf32>
    %2 = vector.shape_cast %1 : vector<2x1x2x128xf32> to vector<2x2x128xf32>
    %c0_3 = arith.constant 0 : index
    %c0_4 = arith.constant 0 : index
    %c0_5 = arith.constant 0 : index
    %c0_6 = arith.constant 0 : index
    %3 = vector.load %arg2[%c0_3, %c0_4, %c0_5, %c0_6] : memref<2x4x2x128xf32, #tpu.memory_space<vmem>>, vector<2x1x2x128xf32>
    %4 = vector.shape_cast %3 : vector<2x1x2x128xf32> to vector<2x2x128xf32>
    %5 = math.absf %2 : vector<2x2x128xf32>
    %cst_7 = arith.constant 1.000000e+00 : f32
    %6 = vector.broadcast %cst_7 : f32 to vector<2x2x128xf32>
    %7 = arith.addf %6, %5 : vector<2x2x128xf32>
    %8 = math.exp %7 : vector<2x2x128xf32>
    %9 = arith.subf %2, %4 : vector<2x2x128xf32>
    %10 = arith.mulf %8, %9 : vector<2x2x128xf32>
    %11 = arith.mulf %10, %10 : vector<2x2x128xf32>
    %12 = arith.addf %0, %11 : vector<2x2x128xf32>
    %c0_8 = arith.constant 0 : index
    %c1 = arith.constant 1 : index
    %c0_9 = arith.constant 0 : index
    %c0_10 = arith.constant 0 : index
    %13 = vector.load %arg3[%c0_8, %c1, %c0_9, %c0_10] : memref<2x4x2x128xf32, #tpu.memory_space<vmem>>, vector<2x1x2x128xf32>
    %14 = vector.shape_cast %13 : vector<2x1x2x128xf32> to vector<2x2x128xf32>
    %c0_11 = arith.constant 0 : index
    %c1_12 = arith.constant 1 : index
    %c0_13 = arith.constant 0 : index
    %c0_14 = arith.constant 0 : index
    %15 = vector.load %arg2[%c0_11, %c1_12, %c0_13, %c0_14] : memref<2x4x2x128xf32, #tpu.memory_space<vmem>>, vector<2x1x2x128xf32>
    %16 = vector.shape_cast %15 : vector<2x1x2x128xf32> to vector<2x2x128xf32>
    %17 = math.absf %14 : vector<2x2x128xf32>
    %cst_15 = arith.constant 1.000000e+00 : f32
    %18 = vector.broadcast %cst_15 : f32 to vector<2x2x128xf32>
    %19 = arith.addf %18, %17 : vector<2x2x128xf32>
    %20 = math.exp %19 : vector<2x2x128xf32>
    %21 = arith.subf %14, %16 : vector<2x2x128xf32>
    %22 = arith.mulf %20, %21 : vector<2x2x128xf32>
    %23 = arith.mulf %22, %22 : vector<2x2x128xf32>
    %24 = arith.addf %12, %23 : vector<2x2x128xf32>
    %c0_16 = arith.constant 0 : index
    %c2 = arith.constant 2 : index
    %c0_17 = arith.constant 0 : index
    %c0_18 = arith.constant 0 : index
    %25 = vector.load %arg3[%c0_16, %c2, %c0_17, %c0_18] : memref<2x4x2x128xf32, #tpu.memory_space<vmem>>, vector<2x1x2x128xf32>
    %26 = vector.shape_cast %25 : vector<2x1x2x128xf32> to vector<2x2x128xf32>
    %c0_19 = arith.constant 0 : index
    %c2_20 = arith.constant 2 : index
    %c0_21 = arith.constant 0 : index
    %c0_22 = arith.constant 0 : index
    %27 = vector.load %arg2[%c0_19, %c2_20, %c0_21, %c0_22] : memref<2x4x2x128xf32, #tpu.memory_space<vmem>>, vector<2x1x2x128xf32>
    %28 = vector.shape_cast %27 : vector<2x1x2x128xf32> to vector<2x2x128xf32>
    %29 = math.absf %26 : vector<2x2x128xf32>
    %cst_23 = arith.constant 1.000000e+00 : f32
    %30 = vector.broadcast %cst_23 : f32 to vector<2x2x128xf32>
    %31 = arith.addf %30, %29 : vector<2x2x128xf32>
    %32 = math.exp %31 : vector<2x2x128xf32>
    %33 = arith.subf %26, %28 : vector<2x2x128xf32>
    %34 = arith.mulf %32, %33 : vector<2x2x128xf32>
    %35 = arith.mulf %34, %34 : vector<2x2x128xf32>
    %36 = arith.addf %24, %35 : vector<2x2x128xf32>
    %c0_24 = arith.constant 0 : index
    %c3 = arith.constant 3 : index
    %c0_25 = arith.constant 0 : index
    %c0_26 = arith.constant 0 : index
    %37 = vector.load %arg3[%c0_24, %c3, %c0_25, %c0_26] : memref<2x4x2x128xf32, #tpu.memory_space<vmem>>, vector<2x1x2x128xf32>
    %38 = vector.shape_cast %37 : vector<2x1x2x128xf32> to vector<2x2x128xf32>
    %c0_27 = arith.constant 0 : index
    %c3_28 = arith.constant 3 : index
    %c0_29 = arith.constant 0 : index
    %c0_30 = arith.constant 0 : index
    %39 = vector.load %arg2[%c0_27, %c3_28, %c0_29, %c0_30] : memref<2x4x2x128xf32, #tpu.memory_space<vmem>>, vector<2x1x2x128xf32>
    %40 = vector.shape_cast %39 : vector<2x1x2x128xf32> to vector<2x2x128xf32>
    %41 = math.absf %38 : vector<2x2x128xf32>
    %cst_31 = arith.constant 1.000000e+00 : f32
    %42 = vector.broadcast %cst_31 : f32 to vector<2x2x128xf32>
    %43 = arith.addf %42, %41 : vector<2x2x128xf32>
    %44 = math.exp %43 : vector<2x2x128xf32>
    %45 = arith.subf %38, %40 : vector<2x2x128xf32>
    %46 = arith.mulf %44, %45 : vector<2x2x128xf32>
    %47 = arith.mulf %46, %46 : vector<2x2x128xf32>
    %48 = arith.addf %36, %47 : vector<2x2x128xf32>
    %49 = math.sqrt %48 : vector<2x2x128xf32>
    %cst_32 = arith.constant dense<0.000000e+00> : vector<2x128xf32>
    %50 = vector.multi_reduction <add>, %49, %cst_32 [0] : vector<2x2x128xf32> to vector<2x128xf32>
    %cst_33 = arith.constant dense<0.000000e+00> : vector<128xf32>
    %51 = vector.multi_reduction <add>, %50, %cst_33 [0] : vector<2x128xf32> to vector<128xf32>
    %52 = vector.shape_cast %51 : vector<128xf32> to vector<1x1x1x128xf32>
    %c0_34 = arith.constant 0 : index
    %c0_35 = arith.constant 0 : index
    %c0_36 = arith.constant 0 : index
    %c0_37 = arith.constant 0 : index
    %53 = vector.load %arg4[%c0_34, %c0_35, %c0_36, %c0_37] : memref<1x1x1x128xf32, #tpu.memory_space<vmem>>, vector<1x1x1x128xf32>
    tpu.vector_store %arg4[%c0_34, %c0_35, %c0_36, %c0_37], %52 {strides = array<i32>} : memref<1x1x1x128xf32, #tpu.memory_space<vmem>>, vector<1x1x1x128xf32>,
    return
  }
  func.func @transform_0(%arg0: i32, %arg1: i32) -> (i32, i32, i32, i32) {
    %c0_i32 = arith.constant 0 : i32
    %c0_i32_0 = arith.constant 0 : i32
    %c0_i32_1 = arith.constant 0 : i32
    return %arg0, %c0_i32, %arg1, %c0_i32_0 : i32, i32, i32, i32
  }
  func.func @transform_1(%arg0: i32, %arg1: i32) -> (i32, i32, i32, i32) {
    %c0_i32 = arith.constant 0 : i32
    %c0_i32_0 = arith.constant 0 : i32
    %c0_i32_1 = arith.constant 0 : i32
    return %arg0, %c0_i32, %arg1, %c0_i32_0 : i32, i32, i32, i32
  }
  func.func @transform_2(%arg0: i32, %arg1: i32) -> (i32, i32, i32, i32) {
    %c0_i32 = arith.constant 0 : i32
    %c0_i32_0 = arith.constant 0 : i32
    %c0_i32_1 = arith.constant 0 : i32
    return %arg0, %arg1, %c0_i32, %c0_i32_0 : i32, i32, i32, i32
  }
}

</mosaic_0001>

<bundles_post_ra>
// kernel: tpu_custom_call.1
= control target key start
LH: loop header
LB: loop body
LE: loop exit
PB: predicated region body
PF: predicated region fallthrough
CT: control target
= control target key end

     0   :  { %7 = vsyncpa [#allocation3], 0  ;;  %s325_s0 = inlined_call_operand.hbm [shape: f32[2,4,2,128], index: 0, kind: input, shape index: {}]   ;;  %s326_s1 = inlined_call_operand.hbm [shape: f32[2,4,2,128], index: 1, kind: input, shape index: {}]   ;;  %s327_s2 = inlined_call_operand.hbm [shape: f32[1,1,1,128], index: 2, kind: output, shape index: {}]  }
   0x1   :  { %8 = vsyncpa [#allocation6], 0 }
   0x2   :  { %9 = vsyncpa [#allocation4], 0  ;;  %s265_s9 = smov [#allocation2]   ;;  %s193_s13 = scalar_lea.hbm %s325_s0, 256 }
   0x3   :  { %s15_s10 = sshll.u32 %s265_s9, 4  ;;  %p194_p0 = scmp.ne.s32.totalorder %s325_s0, %s193_s13  ;;  %s16_s10 = int_to_ptr.vmem [resolvable:$true] %s15_s10 }
   0x4   :  { %p197_p1 = scmp.lt.u32.totalorder %s193_s13, %s325_s0 }
   0x6   :  { %p199_p2 = pnand %p197_p1, %p194_p0 }
   0x8   :  { %202 = shalt.err (!%p199_p2)
}
   0x9   :  { %s203_s18 = scalar_lea.vmem %s16_s10, 256  ;;  %p208_p4 = scmp.lt.s32.totalorder %s16_s10, %s16_s10 }
   0xa   :  { %p204_p3 = scmp.ne.s32.totalorder %s16_s10, %s203_s18  ;;  %p209_p5 = scmp.lt.s32.totalorder %s203_s18, %s203_s18 }
   0xc   :  { %p210_p6 = por %p209_p5, %p208_p4 }
   0xe   :  { %p211_p7 = pnand %p210_p6, %p204_p3 }
  0x10   :  { %214 = shalt.err (!%p211_p7)
}
  0x11   :  { %s266_s19 = smov 32   ;;  %s267_s20 = smov 2  }
  0x12   :  { %21 = dma.hbm_to_vmem [thread:$0]  %s325_s0, 256, %s16_s10, [#allocation3], %s266_s19, %s266_s19, %s267_s20  }
  0x13   :  { %s268_s23 = smov [#allocation5]   ;;  %s215_s27 = scalar_lea.hbm %s326_s1, 256 }
  0x14   :  { %s27_s24 = sshll.u32 %s268_s23, 4  ;;  %p216_p8 = scmp.ne.s32.totalorder %s326_s1, %s215_s27  ;;  %s28_s24 = int_to_ptr.vmem [resolvable:$true] %s27_s24 }
  0x15   :  { %p219_p9 = scmp.lt.u32.totalorder %s215_s27, %s326_s1 }
  0x17   :  { %p221_p10 = pnand %p219_p9, %p216_p8 }
  0x19   :  { %224 = shalt.err (!%p221_p10)
}
  0x1a   :  { %s225_s4 = scalar_lea.vmem %s28_s24, 256  ;;  %p230_p12 = scmp.lt.s32.totalorder %s28_s24, %s28_s24 }
  0x1b   :  { %p226_p11 = scmp.ne.s32.totalorder %s28_s24, %s225_s4  ;;  %p231_p13 = scmp.lt.s32.totalorder %s225_s4, %s225_s4 }
  0x1d   :  { %p232_p0 = por %p231_p13, %p230_p12 }
  0x1f   :  { %p233_p1 = pnand %p232_p0, %p226_p11 }
  0x21   :  { %236 = shalt.err (!%p233_p1)
}
  0x22   :  { %33 = dma.hbm_to_vmem [thread:$0]  %s326_s1, 256, %s28_s24, [#allocation6], %s266_s19, %s266_s19, %s267_s20  }
  0x23   :  { %259 = dma.done.wait [#allocation3], 256  }
  0x24   :  { %260 = vsyncadd [#allocation3], 4294967040 }
  0x25   :  { %261 = dma.done.wait [#allocation6], 256  }
  0x26   :  { %262 = vsyncadd [#allocation6], 4294967040  ;;  %v40_v0 = vld [vmem:[#allocation5] sm:$0x3]  ;;  %v41_v1 = vld [vmem:[#allocation5 + $0x8] sm:$0x3] }
  0x27   :  { %v44_v2 = vand.u32 2147483647, %v40_v0  ;;  %v45_v3 = vand.u32 2147483647, %v41_v1  ;;  %v61_v4 = vld [vmem:[#allocation5 + $0x2] sm:$0x3] }
  0x28   :  { %v62_v5 = vld [vmem:[#allocation5 + $0xa] sm:$0x3]  ;;  %v66_v8 = vand.u32 2147483647, %v61_v4  ;;  %v83_v10 = vld [vmem:[#allocation5 + $0x4] sm:$0x3] }
  0x29   :  { %v46_v6 = vadd.f32 1.0, %v44_v2  ;;  %v47_v7 = vadd.f32 1.0, %v45_v3  ;;  %v67_v9 = vand.u32 2147483647, %v62_v5  ;;  %v309_v11 = vld [vmem:[#allocation5 + $0xc] sm:$0x3] }
  0x2a   :  { %v68_v14 = vadd.f32 1.0, %v66_v8  ;;  %v88_v17 = vand.u32 2147483647, %v83_v10  ;;  %v89_v18 = vand.u32 2147483647, %v309_v11  ;;  %vm140_vm4 = vcmask 1041408  }
  0x2b   :  { %v48_v12 = vmul.f32 1.442695, %v46_v6  ;;  %v50_v13 = vmul.f32 1.442695, %v47_v7  ;;  %v69_v15 = vadd.f32 1.0, %v67_v9  ;;  %s269_s1 = smov [#allocation7]  }
  0x2c   :  { %v70_v16 = vmul.f32 1.442695, %v68_v14  ;;  %v105_v20 = vld [vmem:[#allocation5 + $0x6] sm:$0x3]  ;;  %v106_v21 = vld [vmem:[#allocation5 + $0xe] sm:$0x3] }
  0x2d   :  { %173 = vpow2.f32 %v48_v12  ;;  %v72_v19 = vmul.f32 1.442695, %v69_v15  ;;  %v90_v22 = vadd.f32 1.0, %v88_v17  ;;  %v91_v23 = vadd.f32 1.0, %v89_v18  ;;  %v42_v26 = vld [vmem:[#allocation2] sm:$0x3] }
  0x2e   :  { %175 = vpow2.f32 %v50_v13  ;;  %v110_v24 = vand.u32 2147483647, %v105_v20  ;;  %v111_v25 = vand.u32 2147483647, %v106_v21  ;;  %v43_v29 = vld [vmem:[#allocation2 + $0x8] sm:$0x3]  ;;  %v52_v33 = vsub.f32 %v40_v0, %v42_v26 }
  0x2f   :  { %177 = vpow2.f32 %v70_v16  ;;  %v92_v27 = vmul.f32 1.442695, %v90_v22  ;;  %v94_v28 = vmul.f32 1.442695, %v91_v23  ;;  %v64_v32 = vld [vmem:[#allocation2 + $0x2] sm:$0x3]  ;;  %v53_v37 = vsub.f32 %v41_v1, %v43_v29 }
  0x30   :  { %179 = vpow2.f32 %v72_v19  ;;  %v112_v30 = vadd.f32 1.0, %v110_v24  ;;  %v113_v31 = vadd.f32 1.0, %v111_v25  ;;  %v65_v34 = vld [vmem:[#allocation2 + $0xa] sm:$0x3]  ;;  %v74_v38 = vsub.f32 %v61_v4, %v64_v32  ;;  %v86_v41 = vld [vmem:[#allocation2 + $0x4] sm:$0x3] }
  0x31   :  { %181 = vpow2.f32 %v92_v27  ;;  %v75_v40 = vsub.f32 %v62_v5, %v65_v34  ;;  %v87_v44 = vld [vmem:[#allocation2 + $0xc] sm:$0x3]  ;;  %v96_v50 = vsub.f32 %v83_v10, %v86_v41  ;;  %v108_v51 = vld [vmem:[#allocation2 + $0x6] sm:$0x3]  ;;  %v109_v55 = vld [vmem:[#allocation2 + $0xe] sm:$0x3] }
  0x32   :  { %183 = vpow2.f32 %v94_v28  ;;  %v114_v35 = vmul.f32 1.442695, %v112_v30  ;;  %v116_v36 = vmul.f32 1.442695, %v113_v31  ;;  %v97_v54 = vsub.f32 %v309_v11, %v87_v44  ;;  %s158_s6 = sshll.u32 %s269_s1, 4  ;;  %s159_s6 = int_to_ptr.vmem [resolvable:$true] %s158_s6 }
  0x33   :  { %v118_v59 = vsub.f32 %v105_v20, %v108_v51  ;;  %v119_v63 = vsub.f32 %v106_v21, %v109_v55  ;;  %s237_s7 = scalar_lea.vmem %s159_s6, 16  ;;  %s241_s8 = scalar_lea.vmem %s159_s6, 32 }
  0x34   :  { %185 = vpow2.f32 %v114_v35  ;;  %p238_p2 = scmp.ne.s32.totalorder %s159_s6, %s237_s7  ;;  %p242_p3 = scmp.lt.s32.totalorder %s159_s6, %s159_s6 }
  0x35   :  { %187 = vpow2.f32 %v116_v36  ;;  %p243_p4 = scmp.lt.s32.totalorder %s241_s8, %s237_s7 }
  0x37   :  { %v174_v39 = vpop.eup %173  ;;  %p244_p5 = por %p243_p4, %p242_p3 }
  0x38   :  { %v176_v42 = vpop.eup %175  ;;  %v54_v43 = vmul.f32 %v174_v39, %v52_v33 }
  0x39   :  { %v178_v45 = vpop.eup %177  ;;  %v55_v46 = vmul.f32 %v176_v42, %v53_v37  ;;  %p245_p6 = pnand %p244_p5, %p238_p2 }
  0x3a   :  { %v180_v47 = vpop.eup %179  ;;  %v56_v48 = vmul.f32 %v54_v43, %v54_v43  ;;  %v76_v49 = vmul.f32 %v178_v45, %v74_v38 }
  0x3b   :  { %v57_v52 = vmul.f32 %v55_v46, %v55_v46  ;;  %v77_v53 = vmul.f32 %v180_v47, %v75_v40  ;;  %v182_v57 = vpop.eup %181 }
  0x3c   :  { %v78_v56 = vmul.f32 %v76_v49, %v76_v49  ;;  %v184_v60 = vpop.eup %183  ;;  %v98_v62 = vmul.f32 %v182_v57, %v96_v50 }
  0x3d   :  { %v79_v58 = vmul.f32 %v77_v53, %v77_v53  ;;  %v99_v1 = vmul.f32 %v184_v60, %v97_v54 }
  0x3e   :  { %v80_v61 = vadd.f32 %v78_v56, %v56_v48  ;;  %v186_v2 = vpop.eup %185  ;;  %v100_v3 = vmul.f32 %v98_v62, %v98_v62 }
  0x3f   :  { %v81_v0 = vadd.f32 %v79_v58, %v57_v52  ;;  %v188_v4 = vpop.eup %187  ;;  %v101_v5 = vmul.f32 %v99_v1, %v99_v1  ;;  %v120_v6 = vmul.f32 %v186_v2, %v118_v59 }
  0x40   :  { %v102_v7 = vadd.f32 %v100_v3, %v80_v61  ;;  %v121_v8 = vmul.f32 %v188_v4, %v119_v63 }
  0x41   :  { %v103_v9 = vadd.f32 %v101_v5, %v81_v0  ;;  %v122_v10 = vmul.f32 %v120_v6, %v120_v6 }
  0x42   :  { %v123_v11 = vmul.f32 %v121_v8, %v121_v8 }
  0x43   :  { %v124_v12 = vadd.f32 %v122_v10, %v102_v7 }
  0x44   :  { %v125_v13 = vadd.f32 %v123_v11, %v103_v9 }
  0x45   :  { %189 = vrsqrt.f32 %v124_v12  ;;  %vm128_vm0 = vcmp.eq.f32.partialorder %v124_v12, inf  ;;  %v131_v15 = vand.u32 2147483648, %v124_v12  ;;  %vm130_vm1 = vcmp.eq.f32.partialorder %v124_v12, 0.0 }
  0x46   :  { %191 = vrsqrt.f32 %v125_v13  ;;  %vm135_vm2 = vcmp.eq.f32.partialorder %v125_v13, inf  ;;  %v138_v18 = vand.u32 2147483648, %v125_v13  ;;  %vm137_vm3 = vcmp.eq.f32.partialorder %v125_v13, 0.0 }
  0x4f   :  { %v190_v14 = vpop.eup %189 }
  0x50   :  { %v192_v16 = vpop.eup %191  ;;  %v127_v17 = vmul.f32 %v190_v14, %v124_v12 }
  0x51   :  { %v134_v19 = vmul.f32 %v192_v16, %v125_v13 }
  0x52   :  { %v129_v20 = vsel %vm128_vm0, %v124_v12, %v127_v17 }
  0x53   :  { %v132_v21 = vsel %vm130_vm1, %v131_v15, %v129_v20  ;;  %v136_v22 = vsel %vm135_vm2, %v125_v13, %v134_v19 }
  0x54   :  { %v139_v23 = vsel %vm137_vm3, %v138_v18, %v136_v22  ;;  %v141_v24 = vsel %vm140_vm4, %v132_v21, 0.0 }
  0x55   :  { %v142_v25 = vsel %vm140_vm4, %v139_v23, 0.0 }
  0x56   :  { %v143_v26 = vadd.f32 %v142_v25, %v141_v24 }
  0x58   :  { %v144_v27 = vsel %vm140_vm4, %v143_v26, 0.0 }
  0x59   :  { %v145_v28 = vrot.slane %v144_v27, 4 }
  0x5b   :  { %v146_v29 = vadd.f32 %v145_v28, %v144_v27 }
  0x5d   :  { %v147_v30 = vrot.slane %v146_v29, 2 }
  0x5f   :  { %v148_v31 = vadd.f32 %v147_v30, %v146_v29 }
  0x61   :  { %v149_v32 = vrot.slane %v148_v31, 1 }
  0x63   :  { %v150_v33 = vadd.f32 %v149_v32, %v148_v31 }
  0x65   :  { %151 = vst [vmem:[#allocation7] sm:$0x1] %v150_v33 }
  0x66   :  { %248 = shalt.err (!%p245_p6)
}
  0x67   :  { %s249_s11 = scalar_lea.hbm %s327_s2, 16 }
  0x68   :  { %p250_p7 = scmp.ne.s32.totalorder %s327_s2, %s249_s11  ;;  %p253_p8 = scmp.lt.u32.totalorder %s249_s11, %s327_s2 }
  0x6a   :  { %p255_p9 = pnand %p253_p8, %p250_p7 }
  0x6c   :  { %258 = shalt.err (!%p255_p9)
}
  0x6d   :  { %161 = dma.vmem_to_hbm [thread:$0]  %s159_s6, 16, %s327_s2, [#allocation4]  }
  0x6e   :  { %263 = dma.done.wait [#allocation4], 16  }
  0x6f   :  { %264 = vsyncadd [#allocation4], 4294967280 }
  0x70   :  { %165 = vsyncpa [#allocation3], 1 }
  0x71   :  { %166 = vsyncpa [#allocation6], 1 }
  0x72   :  { %167 = vsyncpa [#allocation4], 1 }

</bundles_post_ra>
